<compile_context>
chip_gen: v7x
topology: tpu7x:2x2x1
jax: 0.10.0
libtpu: 0.0.40
codegen_flags: <defaults>
</compile_context>

<pallas_src>
import functools

import jax
import jax.numpy as jnp
from jax.experimental import pallas as pl
from jax.experimental.pallas import tpu as pltpu

_BN_EPS = 1e-5


def _res2net_kernel(xp_ref, w_ref, b_ref, g_ref, bt_ref, o_ref, acc_ref, *,
                    kernel_size, dilation, pad, t_len):
    i = pl.program_id(0)
    nblk = pl.num_programs(0)
    T = t_len
    B, Tp, Cin = acc_ref.shape
    Cout = w_ref.shape[-1]

    # Step 0 has no carry: zero the scratch once so the unconditional add below
    # is valid.  Per step the sum is a pure value (no write-back); acc_ref is
    # fully overwritten at the end of every step.
    @pl.when(i == 0)
    def _():
        acc_ref[...] = jnp.zeros_like(acc_ref)

    # reflect_pad(x_i + y_{i-1}) == reflect_pad(x_i) + reflect_pad(y_{i-1});
    # the wrapper pre-padded x, the carry is stored already padded.
    xp = xp_ref[0].astype(jnp.float32) + acc_ref[...]        # (B, Tp, Cin) f32
    xb = xp.astype(jnp.bfloat16)                             # single cast, sliced per tap

    # Dilated conv as K accumulated MXU matmuls (no K*(B,T,Cs) im2col temp).
    # M = B*T, contraction = Cin per tap, N = Cout.  bf16 operands, f32 acc.
    w_all = w_ref[i]                                         # (K*Cin, Cout) bf16
    h = jnp.broadcast_to(b_ref[i], (B * T, Cout)).astype(jnp.float32)  # conv bias init
    for j in range(kernel_size):                             # static & small
        tap = xb[:, j * dilation:j * dilation + T, :].reshape(B * T, Cin)
        h = h + jnp.dot(tap, w_all[j * Cin:(j + 1) * Cin, :],
                        preferred_element_type=jnp.float32)
    h = jnp.maximum(h, 0.0)                                  # ReLU

    # BatchNorm1d, training-mode batch statistics over (B, T) per channel.
    # Two-pass centered variance; folded scale/shift epilogue.
    m = jnp.mean(h, axis=0, keepdims=True)                   # (1, Cout)
    d = h - m
    var = jnp.mean(d * d, axis=0, keepdims=True)
    s = g_ref[i] * jax.lax.rsqrt(var + _BN_EPS)              # (1, Cout)
    y = d * s + bt_ref[i]                                    # (B*T, Cout)

    y3 = y.reshape(B, T, Cout)
    o_ref[0] = y3.astype(o_ref.dtype)

    # Carry for the next block: reflect_pad(y_i) into acc_ref.  Center is one
    # bulk store; each reflected boundary side is one small slab store.
    @pl.when(i + 1 < nblk)
    def _():
        acc_ref[:, pad:pad + T, :] = y3
        if pad > 0:                                          # static python
            left = [y3[:, pad - p:pad - p + 1, :] for p in range(pad)]
            right = [y3[:, T - 2 - k:T - 1 - k, :] for k in range(pad)]
            acc_ref[:, 0:pad, :] = (
                left[0] if pad == 1 else jnp.concatenate(left, axis=1))
            acc_ref[:, pad + T:pad + T + pad, :] = (
                right[0] if pad == 1 else jnp.concatenate(right, axis=1))


def res2net_block(x, weights, biases, gammas, betas, *,
                  scale, kernel_size, dilation):
    """x: (B, C, T) float32 (NCT, matching the torch module).
    weights: (scale-1, C_s, C_s, K) -- per-block nn.Conv1d weight (Cout, Cin, K).
    biases / gammas / betas: (scale-1, C_s)."""
    B, C, T = x.shape
    assert C % scale == 0
    Cs = C // scale
    nblk = scale - 1
    assert weights.shape == (nblk, Cs, Cs, kernel_size)

    # "same" padding amount from Conv1dSamePaddingReflect (stride=1).
    L_out = (T - dilation * (kernel_size - 1) - 1) // 1 + 1
    pad = (T - L_out) // 2
    assert T + 2 * pad - dilation * (kernel_size - 1) == T, \
        "dilation*(kernel_size-1) must be even for length-preserving conv"
    assert pad < T, "reflect padding requires pad < T (same constraint as torch)"
    Tp = T + 2 * pad

    # torch.chunk along channels; chunk 0 passes through untouched.
    chunks = x.reshape(B, scale, Cs, T)
    # time-major / channel-lane layout, reflect-padded once in the wrapper
    # (reflect_pad(x + carry) == reflect_pad(x) + reflect_pad(carry)).
    # TODO(synk): the NCT<->NTC transposes cost ~2 extra HBM passes (review
    # item 7); in-kernel vxpose of (Cs,T) blocks would remove them.
    x_rest = jnp.transpose(chunks[:, 1:], (1, 0, 3, 2))          # (nblk, B, T, Cs)
    x_pad = jnp.pad(x_rest, ((0, 0), (0, 0), (pad, pad), (0, 0)), mode="reflect")

    # im2col weight layout: w2d[i, j*Cin + c, o] = W[i, o, c, j]; bf16 for MXU.
    w2d = jnp.transpose(weights, (0, 3, 2, 1)).reshape(
        nblk, kernel_size * Cs, Cs).astype(jnp.bfloat16)
    b2 = biases.reshape(nblk, 1, Cs).astype(jnp.float32)
    g2 = gammas.reshape(nblk, 1, Cs).astype(jnp.float32)
    bt2 = betas.reshape(nblk, 1, Cs).astype(jnp.float32)

    # VMEM budget, generation-aware (v7x: 64 MiB physical; v5e/v6e: 128 MiB).
    blk_in = B * Tp * Cs * 4
    blk_out = B * T * Cs * 4
    params = nblk * (kernel_size * Cs * Cs * 2 + 3 * Cs * 4)
    temps = B * Tp * Cs * 6 + 3 * B * T * Cs * 4     # xp f32 + xb bf16 + h/d/y f32
    scratch = B * Tp * Cs * 4
    vmem_est = 2 * (blk_in + blk_out) + params + temps + scratch + (2 << 20)
    try:
        vmem_cap = pltpu.get_tpu_info().vmem_capacity_bytes
    except Exception:
        vmem_cap = 64 << 20                          # conservative fallback (v7x)
    vmem_limit = int(min(max(vmem_est, 16 << 20), int(0.75 * vmem_cap)))

    kern = functools.partial(_res2net_kernel, kernel_size=kernel_size,
                             dilation=dilation, pad=pad, t_len=T)

    out = pl.pallas_call(
        kern,
        out_shape=jax.ShapeDtypeStruct((nblk, B, T, Cs), x.dtype),
        grid_spec=pltpu.PrefetchScalarGridSpec(
            num_scalar_prefetch=0,
            grid=(nblk,),
            in_specs=[
                # per-step padded input chunk
                pl.BlockSpec((1, B, Tp, Cs), lambda i: (i, 0, 0, 0)),
                # parameters stay VMEM-resident (constant block index), indexed
                # with pl.program_id inside the kernel.
                pl.BlockSpec((nblk, kernel_size * Cs, Cs), lambda i: (0, 0, 0)),
                pl.BlockSpec((nblk, 1, Cs), lambda i: (0, 0, 0)),
                pl.BlockSpec((nblk, 1, Cs), lambda i: (0, 0, 0)),
                pl.BlockSpec((nblk, 1, Cs), lambda i: (0, 0, 0)),
            ],
            out_specs=pl.BlockSpec((1, B, T, Cs), lambda i: (i, 0, 0, 0)),
            scratch_shapes=[pltpu.VMEM((B, Tp, Cs), jnp.float32)],
        ),
        compiler_params=pltpu.CompilerParams(
            dimension_semantics=("arbitrary",),      # serial Res2Net carry chain
            vmem_limit_bytes=vmem_limit),
    )(x_pad, w2d, b2, g2, bt2)

    # back to NCT and concat with the untouched first chunk.
    y_rest = jnp.transpose(out, (1, 0, 3, 2)).reshape(B, nblk * Cs, T)
    return jnp.concatenate([chunks[:, 0], y_rest], axis=1)


def _reference(x, weights, biases, gammas, betas, *, scale, kernel_size, dilation):
    """Pure-JAX reference (same bf16 matmul rounding as the kernel)."""
    B, C, T = x.shape
    Cs = C // scale
    nblk = scale - 1
    pad = dilation * (kernel_size - 1) // 2
    chunks = x.reshape(B, scale, Cs, T)
    ys = [chunks[:, 0]]
    y_prev = None
    for i in range(nblk):
        xi = chunks[:, i + 1]
        inp = xi if i == 0 else xi + y_prev
        xpad = jnp.pad(inp, ((0, 0), (0, 0), (pad, pad)), mode="reflect")
        h = jnp.zeros((B, Cs, T), jnp.float32)
        for j in range(kernel_size):
            xs = xpad[:, :, j * dilation:j * dilation + T]
            h = h + jnp.einsum("oc,bct->bot",
                               weights[i, :, :, j].astype(jnp.bfloat16),
                               xs.astype(jnp.bfloat16),
                               preferred_element_type=jnp.float32)
        h = h + biases[i][None, :, None]
        h = jnp.maximum(h, 0.0)
        mean = jnp.mean(h, axis=(0, 2), keepdims=True)
        var = jnp.mean((h - mean) ** 2, axis=(0, 2), keepdims=True)
        hn = (h - mean) * jax.lax.rsqrt(var + _BN_EPS)
        y_prev = gammas[i][None, :, None] * hn + betas[i][None, :, None]
        ys.append(y_prev)
    return jnp.concatenate(ys, axis=1)


if __name__ == "__main__":
    key = jax.random.PRNGKey(0)
    B, C, T = 2, 32, 16
    scale, kernel_size, dilation = 4, 3, 1
    Cs = C // scale
    nblk = scale - 1

    k1, k2, k3, k4, k5 = jax.random.split(key, 5)
    x = jax.random.normal(k1, (B, C, T), jnp.float32)
    # nn.Conv1d weight layout per block: (Cout, Cin, K)
    weights = 0.2 * jax.random.normal(k2, (nblk, Cs, Cs, kernel_size), jnp.float32)
    biases = 0.1 * jax.random.normal(k3, (nblk, Cs), jnp.float32)
    gammas = 1.0 + 0.1 * jax.random.normal(k4, (nblk, Cs), jnp.float32)
    betas = 0.1 * jax.random.normal(k5, (nblk, Cs), jnp.float32)

    y = res2net_block(x, weights, biases, gammas, betas,
                      scale=scale, kernel_size=kernel_size, dilation=dilation)
    jax.block_until_ready(y)
    assert y.shape == (B, C, T), y.shape
    assert jnp.all(jnp.isfinite(y))

    y_ref = _reference(x, weights, biases, gammas, betas,
                       scale=scale, kernel_size=kernel_size, dilation=dilation)
    err = float(jnp.max(jnp.abs(y - y_ref)))
    assert err < 2e-2, f"max abs diff vs reference = {err}"
    print("KERNEL_OK")
</pallas_src>

<mosaic_0001>
module attributes {stable_mosaic.version = 11 : i64} {
  func.func @_res2net_kernel(%arg0: i32, %arg1: memref<1x2x18x8xf32, #tpu.memory_space<vmem>>, %arg2: memref<3x24x8xbf16, #tpu.memory_space<vmem>>, %arg3: memref<3x1x8xf32, #tpu.memory_space<vmem>>, %arg4: memref<3x1x8xf32, #tpu.memory_space<vmem>>, %arg5: memref<3x1x8xf32, #tpu.memory_space<vmem>>, %arg6: memref<1x2x16x8xf32, #tpu.memory_space<vmem>>, %arg7: memref<2x18x8xf32, #tpu.memory_space<vmem>>) attributes {dimension_semantics = [#tpu.dimension_semantics<arbitrary>], iteration_bounds = array<i64: 3>, scalar_prefetch = 0 : i64, scratch_operands = 1 : i64, tpu.core_type = #tpu.core_type<tc>, window_params = [{transform_indices = @transform_0, window_bounds = array<i64: 1, 2, 18, 8>}, {pipeline_mode = #tpu.pipeline_mode<synchronous>, transform_indices = @transform_1, window_bounds = array<i64: 3, 24, 8>}, {pipeline_mode = #tpu.pipeline_mode<synchronous>, transform_indices = @transform_2, window_bounds = array<i64: 3, 1, 8>}, {pipeline_mode = #tpu.pipeline_mode<synchronous>, transform_indices = @transform_3, window_bounds = array<i64: 3, 1, 8>}, {pipeline_mode = #tpu.pipeline_mode<synchronous>, transform_indices = @transform_4, window_bounds = array<i64: 3, 1, 8>}, {transform_indices = @transform_5, window_bounds = array<i64: 1, 2, 16, 8>}]} {
    %c0_i32 = arith.constant 0 : i32
    %0 = arith.cmpi eq, %arg0, %c0_i32 : i32
    %1 = arith.extui %0 : i1 to i32
    %c0_i32_0 = arith.constant 0 : i32
    %2 = arith.cmpi ne, %1, %c0_i32_0 : i32
    scf.if %2 {
      %cst_28 = arith.constant 0.000000e+00 : f32
      %66 = vector.broadcast %cst_28 : f32 to vector<2x18x8xf32>
      %c0_29 = arith.constant 0 : index
      %c0_30 = arith.constant 0 : index
      %c0_31 = arith.constant 0 : index
      %67 = vector.load %arg7[%c0_29, %c0_30, %c0_31] : memref<2x18x8xf32, #tpu.memory_space<vmem>>, vector<2x18x8xf32>
      tpu.vector_store %arg7[%c0_29, %c0_30, %c0_31], %66 {strides = array<i32>} : memref<2x18x8xf32, #tpu.memory_space<vmem>>, vector<2x18x8xf32>,
    } else {
    }
    %c0 = arith.constant 0 : index
    %c0_1 = arith.constant 0 : index
    %c0_2 = arith.constant 0 : index
    %c0_3 = arith.constant 0 : index
    %3 = vector.load %arg1[%c0, %c0_1, %c0_2, %c0_3] : memref<1x2x18x8xf32, #tpu.memory_space<vmem>>, vector<1x2x18x8xf32>
    %4 = vector.shape_cast %3 : vector<1x2x18x8xf32> to vector<2x18x8xf32>
    %c0_4 = arith.constant 0 : index
    %c0_5 = arith.constant 0 : index
    %c0_6 = arith.constant 0 : index
    %5 = vector.load %arg7[%c0_4, %c0_5, %c0_6] : memref<2x18x8xf32, #tpu.memory_space<vmem>>, vector<2x18x8xf32>
    %6 = arith.addf %4, %5 : vector<2x18x8xf32>
    %7 = arith.truncf %6 : vector<2x18x8xf32> to vector<2x18x8xbf16>
    %8 = arith.index_cast %arg0 : i32 to index
    %c0_7 = arith.constant 0 : index
    %c0_8 = arith.constant 0 : index
    %9 = vector.load %arg2[%8, %c0_7, %c0_8] : memref<3x24x8xbf16, #tpu.memory_space<vmem>>, vector<1x24x8xbf16>
    %10 = vector.shape_cast %9 : vector<1x24x8xbf16> to vector<24x8xbf16>
    %11 = arith.index_cast %arg0 : i32 to index
    %c0_9 = arith.constant 0 : index
    %c0_10 = arith.constant 0 : index
    %12 = vector.load %arg3[%11, %c0_9, %c0_10] : memref<3x1x8xf32, #tpu.memory_space<vmem>>, vector<1x1x8xf32>
    %13 = vector.shape_cast %12 : vector<1x1x8xf32> to vector<1x8xf32>
    %14 = vector.shape_cast %13 : vector<1x8xf32> to vector<1x8xf32>
    %15 = vector.broadcast %14 : vector<1x8xf32> to vector<32x8xf32>
    %16 = vector.extract_strided_slice %7 {offsets = [0, 0, 0], sizes = [2, 16, 8], strides = [1, 1, 1]} : vector<2x18x8xbf16> to vector<2x16x8xbf16>
    %17 = vector.shape_cast %16 : vector<2x16x8xbf16> to vector<32x8xbf16>
    %18 = vector.extract_strided_slice %10 {offsets = [0, 0], sizes = [8, 8], strides = [1, 1]} : vector<24x8xbf16> to vector<8x8xbf16>
    %cst = arith.constant dense<0.000000e+00> : vector<32x8xf32>
    %19 = tpu.matmul %17, %18, %cst {dimension_numbers = #tpu.dot_dimension_numbers<[1], [0], [0], [1], [0, 0, 1, 1], [], []>} : vector<32x8xbf16>, vector<8x8xbf16>, vector<32x8xf32> -> vector<32x8xf32>
    %20 = arith.addf %15, %19 : vector<32x8xf32>
    %21 = vector.extract_strided_slice %7 {offsets = [0, 1, 0], sizes = [2, 16, 8], strides = [1, 1, 1]} : vector<2x18x8xbf16> to vector<2x16x8xbf16>
    %22 = vector.shape_cast %21 : vector<2x16x8xbf16> to vector<32x8xbf16>
    %23 = vector.extract_strided_slice %10 {offsets = [8, 0], sizes = [8, 8], strides = [1, 1]} : vector<24x8xbf16> to vector<8x8xbf16>
    %cst_11 = arith.constant dense<0.000000e+00> : vector<32x8xf32>
    %24 = tpu.matmul %22, %23, %cst_11 {dimension_numbers = #tpu.dot_dimension_numbers<[1], [0], [0], [1], [0, 0, 1, 1], [], []>} : vector<32x8xbf16>, vector<8x8xbf16>, vector<32x8xf32> -> vector<32x8xf32>
    %25 = arith.addf %20, %24 : vector<32x8xf32>
    %26 = vector.extract_strided_slice %7 {offsets = [0, 2, 0], sizes = [2, 16, 8], strides = [1, 1, 1]} : vector<2x18x8xbf16> to vector<2x16x8xbf16>
    %27 = vector.shape_cast %26 : vector<2x16x8xbf16> to vector<32x8xbf16>
    %28 = vector.extract_strided_slice %10 {offsets = [16, 0], sizes = [8, 8], strides = [1, 1]} : vector<24x8xbf16> to vector<8x8xbf16>
    %cst_12 = arith.constant dense<0.000000e+00> : vector<32x8xf32>
    %29 = tpu.matmul %27, %28, %cst_12 {dimension_numbers = #tpu.dot_dimension_numbers<[1], [0], [0], [1], [0, 0, 1, 1], [], []>} : vector<32x8xbf16>, vector<8x8xbf16>, vector<32x8xf32> -> vector<32x8xf32>
    %30 = arith.addf %25, %29 : vector<32x8xf32>
    %cst_13 = arith.constant 0.000000e+00 : f32
    %31 = vector.broadcast %cst_13 : f32 to vector<32x8xf32>
    %32 = arith.maximumf %30, %31 : vector<32x8xf32>
    %cst_14 = arith.constant dense<0.000000e+00> : vector<8xf32>
    %33 = vector.multi_reduction <add>, %32, %cst_14 [0] : vector<32x8xf32> to vector<8xf32>
    %34 = vector.shape_cast %33 : vector<8xf32> to vector<1x8xf32>
    %cst_15 = arith.constant 3.200000e+01 : f32
    %35 = vector.broadcast %cst_15 : f32 to vector<1x8xf32>
    %36 = arith.divf %34, %35 : vector<1x8xf32>
    %37 = vector.broadcast %36 : vector<1x8xf32> to vector<32x8xf32>
    %38 = arith.subf %32, %37 : vector<32x8xf32>
    %39 = arith.mulf %38, %38 : vector<32x8xf32>
    %cst_16 = arith.constant dense<0.000000e+00> : vector<8xf32>
    %40 = vector.multi_reduction <add>, %39, %cst_16 [0] : vector<32x8xf32> to vector<8xf32>
    %41 = vector.shape_cast %40 : vector<8xf32> to vector<1x8xf32>
    %cst_17 = arith.constant 3.200000e+01 : f32
    %42 = vector.broadcast %cst_17 : f32 to vector<1x8xf32>
    %43 = arith.divf %41, %42 : vector<1x8xf32>
    %44 = arith.index_cast %arg0 : i32 to index
    %c0_18 = arith.constant 0 : index
    %c0_19 = arith.constant 0 : index
    %45 = vector.load %arg4[%44, %c0_18, %c0_19] : memref<3x1x8xf32, #tpu.memory_space<vmem>>, vector<1x1x8xf32>
    %46 = vector.shape_cast %45 : vector<1x1x8xf32> to vector<1x8xf32>
    %cst_20 = arith.constant 9.99999974E-6 : f32
    %47 = vector.broadcast %cst_20 : f32 to vector<1x8xf32>
    %48 = arith.addf %43, %47 : vector<1x8xf32>
    %49 = math.rsqrt %48 : vector<1x8xf32>
    %50 = arith.mulf %46, %49 : vector<1x8xf32>
    %51 = vector.broadcast %50 : vector<1x8xf32> to vector<32x8xf32>
    %52 = arith.mulf %38, %51 : vector<32x8xf32>
    %53 = arith.index_cast %arg0 : i32 to index
    %c0_21 = arith.constant 0 : index
    %c0_22 = arith.constant 0 : index
    %54 = vector.load %arg5[%53, %c0_21, %c0_22] : memref<3x1x8xf32, #tpu.memory_space<vmem>>, vector<1x1x8xf32>
    %55 = vector.shape_cast %54 : vector<1x1x8xf32> to vector<1x8xf32>
    %56 = vector.broadcast %55 : vector<1x8xf32> to vector<32x8xf32>
    %57 = arith.addf %52, %56 : vector<32x8xf32>
    %58 = vector.shape_cast %57 : vector<32x8xf32> to vector<2x16x8xf32>
    %c0_23 = arith.constant 0 : index
    %c0_24 = arith.constant 0 : index
    %c0_25 = arith.constant 0 : index
    %c0_26 = arith.constant 0 : index
    %59 = vector.load %arg6[%c0_23, %c0_24, %c0_25, %c0_26] : memref<1x2x16x8xf32, #tpu.memory_space<vmem>>, vector<1x2x16x8xf32>
    %60 = vector.shape_cast %59 : vector<1x2x16x8xf32> to vector<2x16x8xf32>
    %61 = vector.shape_cast %58 : vector<2x16x8xf32> to vector<1x2x16x8xf32>
    tpu.vector_store %arg6[%c0_23, %c0_24, %c0_25, %c0_26], %61 {strides = array<i32>} : memref<1x2x16x8xf32, #tpu.memory_space<vmem>>, vector<1x2x16x8xf32>,
    %c1_i32 = arith.constant 1 : i32
    %62 = arith.addi %arg0, %c1_i32 : i32
    %c3_i32 = arith.constant 3 : i32
    %63 = arith.cmpi slt, %62, %c3_i32 : i32
    %64 = arith.extui %63 : i1 to i32
    %c0_i32_27 = arith.constant 0 : i32
    %65 = arith.cmpi ne, %64, %c0_i32_27 : i32
    scf.if %65 {
      %c0_28 = arith.constant 0 : index
      %c1 = arith.constant 1 : index
      %c0_29 = arith.constant 0 : index
      %66 = vector.load %arg7[%c0_28, %c1, %c0_29] : memref<2x18x8xf32, #tpu.memory_space<vmem>>, vector<2x16x8xf32>
      tpu.vector_store %arg7[%c0_28, %c1, %c0_29], %58 {strides = array<i32>} : memref<2x18x8xf32, #tpu.memory_space<vmem>>, vector<2x16x8xf32>,
      %67 = vector.extract_strided_slice %58 {offsets = [0, 1, 0], sizes = [2, 1, 8], strides = [1, 1, 1]} : vector<2x16x8xf32> to vector<2x1x8xf32>
      %68 = vector.extract_strided_slice %58 {offsets = [0, 14, 0], sizes = [2, 1, 8], strides = [1, 1, 1]} : vector<2x16x8xf32> to vector<2x1x8xf32>
      %c0_30 = arith.constant 0 : index
      %c0_31 = arith.constant 0 : index
      %c0_32 = arith.constant 0 : index
      %69 = vector.load %arg7[%c0_30, %c0_31, %c0_32] : memref<2x18x8xf32, #tpu.memory_space<vmem>>, vector<2x1x8xf32>
      tpu.vector_store %arg7[%c0_30, %c0_31, %c0_32], %67 {strides = array<i32>} : memref<2x18x8xf32, #tpu.memory_space<vmem>>, vector<2x1x8xf32>,
      %c0_33 = arith.constant 0 : index
      %c17 = arith.constant 17 : index
      %c0_34 = arith.constant 0 : index
      %70 = vector.load %arg7[%c0_33, %c17, %c0_34] : memref<2x18x8xf32, #tpu.memory_space<vmem>>, vector<2x1x8xf32>
      tpu.vector_store %arg7[%c0_33, %c17, %c0_34], %68 {strides = array<i32>} : memref<2x18x8xf32, #tpu.memory_space<vmem>>, vector<2x1x8xf32>,
    } else {
    }
    return
  }
  func.func @transform_0(%arg0: i32) -> (i32, i32, i32, i32) {
    %c0_i32 = arith.constant 0 : i32
    %c0_i32_0 = arith.constant 0 : i32
    %c0_i32_1 = arith.constant 0 : i32
    %c0_i32_2 = arith.constant 0 : i32
    return %arg0, %c0_i32, %c0_i32_0, %c0_i32_1 : i32, i32, i32, i32
  }
  func.func @transform_1(%arg0: i32) -> (i32, i32, i32) {
    %c0_i32 = arith.constant 0 : i32
    %c0_i32_0 = arith.constant 0 : i32
    %c0_i32_1 = arith.constant 0 : i32
    %c0_i32_2 = arith.constant 0 : i32
    return %c0_i32, %c0_i32_0, %c0_i32_1 : i32, i32, i32
  }
  func.func @transform_2(%arg0: i32) -> (i32, i32, i32) {
    %c0_i32 = arith.constant 0 : i32
    %c0_i32_0 = arith.constant 0 : i32
    %c0_i32_1 = arith.constant 0 : i32
    %c0_i32_2 = arith.constant 0 : i32
    return %c0_i32, %c0_i32_0, %c0_i32_1 : i32, i32, i32
  }
  func.func @transform_3(%arg0: i32) -> (i32, i32, i32) {
    %c0_i32 = arith.constant 0 : i32
    %c0_i32_0 = arith.constant 0 : i32
    %c0_i32_1 = arith.constant 0 : i32
    %c0_i32_2 = arith.constant 0 : i32
    return %c0_i32, %c0_i32_0, %c0_i32_1 : i32, i32, i32
  }
  func.func @transform_4(%arg0: i32) -> (i32, i32, i32) {
    %c0_i32 = arith.constant 0 : i32
    %c0_i32_0 = arith.constant 0 : i32
    %c0_i32_1 = arith.constant 0 : i32
    %c0_i32_2 = arith.constant 0 : i32
    return %c0_i32, %c0_i32_0, %c0_i32_1 : i32, i32, i32
  }
  func.func @transform_5(%arg0: i32) -> (i32, i32, i32, i32) {
    %c0_i32 = arith.constant 0 : i32
    %c0_i32_0 = arith.constant 0 : i32
    %c0_i32_1 = arith.constant 0 : i32
    %c0_i32_2 = arith.constant 0 : i32
    return %arg0, %c0_i32, %c0_i32_0, %c0_i32_1 : i32, i32, i32, i32
  }
}

</mosaic_0001>

<bundles_post_ra>
// kernel: tpu_custom_call.1
= control target key start
LH: loop header
LB: loop body
LE: loop exit
PB: predicated region body
PF: predicated region fallthrough
CT: control target
= control target key end

     0   :  { %s759_s18 = smov 0   ;;  %s836_s0 = inlined_call_operand.vmem [shape: f32[3,2,18,8], index: 0, kind: input, shape index: {}]   ;;  %s837_s1 = inlined_call_operand.vmem [shape: bf16[3,24,8], index: 1, kind: input, shape index: {}]   ;;  %s838_s2 = inlined_call_operand.vmem [shape: f32[3,1,8], index: 2, kind: input, shape index: {}]   ;;  %s839_s3 = inlined_call_operand.vmem [shape: f32[3,1,8], index: 3, kind: input, shape index: {}]   ;;  %s840_s4 = inlined_call_operand.vmem [shape: f32[3,1,8], index: 4, kind: input, shape index: {}]   ;;  %s841_s5 = inlined_call_operand.vmem [shape: f32[3,2,16,8], index: 5, kind: output, shape index: {}]  }
   0x1 LB: > { %s765_s19 = sadd.s32 4294967295, %s726_s18   ;;  %p647_p0 = scmp.ge.s32.totalorder %s726_s18, 1  ;;  %s726_s18 = sphi %s759_s18, %s15_s18  }
   0x2   : > { %p187_p1 = scmp.lt.s32.totalorder %s726_s18, 4 }
   0x4   : > { %p188_p2 = pnand %p647_p0, %p187_p1 }
   0x5   : > { %p215_p3 = scmp.lt.s32.totalorder (!%p188_p2), %s765_s19, 2  ;;  %p651_p4 = scmp.ne.s32.totalorder (!%p188_p2), %s765_s19, 0 }
   0x6   : > { %191 = sbr.rel (%p188_p2) target bundleno = 341 (0x155), region = 40 }
   0xd   : > { %s216_s20 = scalar_select %p215_p3, %s765_s19, 2 }
   0xe   : > { %229 = sbr.rel (%p651_p4) target bundleno = 21 (0x15), region = 44  ;;  %vm230_vm0 = vcmask (!%p651_p4), 64512   ;;  %vm233_vm1 = vcmask (!%p651_p4), 58368   ;;  %v728_v0 = vmov (!%p651_p4), 0.0  }
   0xf   : > { %s708_s21 = smul.u32 48, %s216_s20  ;;  %s664_s22 = sshll.u32 %s216_s20, 5  ;;  %231 = vst.msk [vmem:[#allocation2] sm:$0xff] (!%p651_p4), %vm230_vm0, %v728_v0  ;;  %232 = vst.msk [vmem:[#allocation2 + $0x8] sm:$0xff] (!%p651_p4), %vm230_vm0, %v728_v0 }
  0x10   : > { %s774_s25 = scalar_lea.vmem %s841_s5, %s664_s22  ;;  %235 = vst.msk [vmem:[#allocation2 + $0x18] sm:$0xff] (!%p651_p4), %vm230_vm0, %v728_v0  ;;  %236 = vst.msk [vmem:[#allocation2 + $0x20] sm:$0xff] (!%p651_p4), %vm230_vm0, %v728_v0 }
  0x11   : > { %s219_s28 = scalar_lea.vmem %s836_s0, %s708_s21  ;;  %234 = vst.msk [vmem:[#allocation2 + $0x10] sm:$0x3] (!%p651_p4), %vm233_vm1, %v728_v0  ;;  %237 = vst.msk [vmem:[#allocation2 + $0x28] sm:$0x3] (!%p651_p4), %vm233_vm1, %v728_v0 }
  0x15 PF: > { %s665_s29 = smul.u32 12, %s765_s19  ;;  %v238_v1 = vld [vmem:[%s219_s28] sm:$0xff]  ;;  %v239_v2 = vld [vmem:[%s219_s28 + $0x8] sm:$0xff]  ;;  %v240_v3 = vld [vmem:[%s219_s28 + $0x10] sm:$0x3]  ;;  %vm281_vm2 = vcmask 1043456   ;;  %s266_s11 = scalar_lea.vmem %s838_s2, %s765_s19 }
  0x16   : > { %v244_v4 = vld [vmem:[#allocation2] sm:$0xff]  ;;  %v245_v5 = vld [vmem:[#allocation2 + $0x8] sm:$0xff]  ;;  %v241_v10 = vld [vmem:[%s219_s28 + $0x18] sm:$0xff]  ;;  %vm274_vm3 = vcmask 64512   ;;  %vm338_vm4 = vsmask.f32 7424  ;;  %s537_s14 = scalar_lea.vmem %s839_s3, %s765_s19  ;;  %s552_s17 = scalar_lea.vmem %s840_s4, %s765_s19 }
  0x17   : > { %s262_s7 = scalar_lea.vmem %s837_s1, %s665_s29  ;;  %v250_v7 = vadd.f32 %v244_v4, %v238_v1  ;;  %v251_v8 = vadd.f32 %v245_v5, %v239_v2  ;;  %v242_v11 = vld [vmem:[%s219_s28 + $0x20] sm:$0xff]  ;;  %v243_v12 = vld [vmem:[%s219_s28 + $0x28] sm:$0x3]  ;;  %v247_v15 = vld [vmem:[#allocation2 + $0x18] sm:$0xff]  ;;  %vm427_vm5 = vcmask 1046528   ;;  %s568_s8 = sadd.s32 1, %s765_s19 }
  0x18   : > { %v246_v6 = vld [vmem:[#allocation2 + $0x10] sm:$0x3]  ;;  %v264_v13 = vld [vmem:[%s262_s7 + $0x4] sm:$0xf]  ;;  %v265_v14 = vld [vmem:[%s262_s7 + $0x8] sm:$0xf]  ;;  %v253_v21 = vadd.f32 %v247_v15, %v241_v10 }
  0x19   : > { %v252_v9 = vadd.f32 %v246_v6, %v240_v3  ;;  %706 = vmatprep.subr.msk.bf16.mxu0 %vm281_vm2, %v264_v13  ;;  %v368_v16 = vsel %vm281_vm2, %v264_v13, 0  ;;  %v256_v17 = vpack.c.bf16 %v251_v8, %v250_v7  ;;  %v248_v19 = vld [vmem:[#allocation2 + $0x20] sm:$0xff]  ;;  %v249_v20 = vld [vmem:[#allocation2 + $0x28] sm:$0x3]  ;;  %v441_v43 = vsel %vm281_vm2, %v265_v14, 0  ;;  %p661_p5 = scmp.ge.s32.totalorder %s568_s8, 3 }
  0x1a   : > { %v263_v22 = vld [vmem:[%s262_s7] sm:$0xf]  ;;  %682 = vmatpush3.bf16.msra.mxu0 %v368_v16  ;;  %v254_v23 = vadd.f32 %v248_v19, %v242_v11  ;;  %v255_v24 = vadd.f32 %v249_v20, %v243_v12  ;;  %vm577_vm6 = vcmask (!%p661_p5), 58369   ;;  %vm580_vm7 = vcmask (!%p661_p5), 63494  }
  0x1b   : > { %v257_v18 = vpack.c.bf16 %v252_v9, %v252_v9  ;;  %705 = vmatprep.subr.msk.bf16.mxu1 %vm281_vm2, %v263_v22  ;;  %v283_v25 = vsel %vm281_vm2, %v263_v22, 0  ;;  %v339_v26 = vshrl.u32 %v256_v17, 16  ;;  %v341_v27 = vshll.u32 %v256_v17, 16  ;;  %707 = vmatprep.subr.msk.bf16.mxu0 %vm281_vm2, %v265_v14  ;;  %v653_v53 = vld [vmem:[%s266_s11] ss:$0 sm:$0xff] }
  0x1c   : > { %676 = vmatpush3.bf16.msra.mxu1 %v283_v25  ;;  %v258_v29 = vpack.c.bf16 %v254_v23, %v253_v21  ;;  %v259_v30 = vpack.c.bf16 %v255_v24, %v255_v24  ;;  %677 = vmatprep.mubr.msk.bf16.mxu1 %vm274_vm3, %v256_v17  ;;  %v428_v37 = vrot.slane %v256_v17, 1 }
  0x1d   : > { %v346_v28 = vshll.u32 %v257_v18, 16  ;;  %v343_v31 = vrot.slane %v341_v27, 1  ;;  %v429_v38 = vrot.slane %v257_v18, 1 }
  0x1e   : > { %v350_v33 = vshrl.u32 %v258_v29, 16  ;;  %v352_v34 = vshll.u32 %v258_v29, 16  ;;  %v357_v35 = vshll.u32 %v259_v30, 16  ;;  %v431_v46 = vrot.slane %v258_v29, 1 }
  0x1f   : > { %v348_v32 = vrot.slane %v346_v28, 1  ;;  %678 = vmatmul.mubr.msk.bf16.vlgmr.msra.gmra.mrb[0].mxu1 %vm274_vm3, %v258_v29  ;;  %v344_v36 = vor.u32 %v343_v31, %v339_v26  ;;  %v430_v44 = vsel %vm427_vm5, %v428_v37, %v429_v38  ;;  %v432_v47 = vrot.slane %v259_v30, 1 }
  0x20   : > { %v354_v39 = vrot.slane %v352_v34, 1  ;;  %v359_v40 = vrot.slane %v357_v35, 1 }
  0x21   : > { %v349_v41 = vsel %vm338_vm4, %v344_v36, %v348_v32  ;;  %v433_v48 = vsel %vm427_vm5, %v431_v46, %v432_v47 }
  0x22   : > { %683 = vmatprep.mubr.msk.bf16.mxu0 %vm274_vm3, %v349_v41  ;;  %v355_v42 = vor.u32 %v354_v39, %v350_v33 }
  0x24   : > { %v360_v45 = vsel %vm338_vm4, %v355_v42, %v359_v40 }
  0x25   : > { %684 = vmatmul.mubr.msk.bf16.vlgmr.msra.gmra.mrb[0].mxu0 %vm274_vm3, %v360_v45  ;;  %v538_v45 = vld [vmem:[%s537_s14] sm:$0x1] }
  0x26   : > { %688 = vmatpush3.bf16.msra.mxu0 %v441_v43  ;;  %689 = vmatprep.mubr.msk.bf16.mxu0 %vm274_vm3, %v430_v44  ;;  %v543_v43 = vlaneseq }
  0x28   : > { %v544_v44 = vshrl.u32 %v543_v43, 7 }
  0x2a   : > { %v545_v46 = vsub.s32 0, %v544_v44 }
  0x31   : > { %690 = vmatmul.mubr.msk.bf16.vlgmr.msra.gmra.mrb[0].mxu0 %vm274_vm3, %v433_v48 }
  0xf2   : > { %v679_v49 = vpop.f32.mrb[0].mxu1 }
  0xf3   : > { %v319_v50 = vpop.f32.mrb[1].mxu1  ;;  %v336_v54 = vadd.f32 %v679_v49, %v653_v53 }
  0xf4   : > { %v680_v51 = vpop.f32.mrb[2].mxu1  ;;  %v334_v55 = vadd.f32 %v653_v53, %v319_v50  ;;  %v660_v50 = vld [vmem:[%s552_s17] ss:$0 sm:$0xff] }
  0xf5   : > { %v322_v52 = vpop.f32.mrb[3].mxu1  ;;  %v337_v57 = vadd.f32 %v680_v51, %v653_v53 }
  0xf6   : > { %v335_v60 = vadd.f32 %v653_v53, %v322_v52 }
 0x104   : > { %v691_v56 = vpop.f32.mrb[0].mxu0 }
 0x105   : > { %v694_v58 = vadd.f32 %v691_v56, %v336_v54  ;;  %v477_v59 = vpop.f32.mrb[1].mxu0 }
 0x106   : > { %v696_v61 = vadd.f32 %v477_v59, %v334_v55  ;;  %v692_v62 = vpop.f32.mrb[2].mxu0 }
 0x107   : > { %v698_v63 = vadd.f32 %v692_v62, %v337_v57  ;;  %v480_v0 = vpop.f32.mrb[3].mxu0  ;;  %v498_v3 = vmax.f32 %v694_v58, 0.0 }
 0x108   : > { %v496_v1 = vmax.f32 %v696_v61, 0.0  ;;  %v700_v2 = vadd.f32 %v480_v0, %v335_v60 }
 0x109   : > { %v499_v6 = vmax.f32 %v698_v63, 0.0  ;;  %v503_v9 = vsel %vm274_vm3, %v498_v3, 0.0 }
 0x10a   : > { %v497_v4 = vmax.f32 %v700_v2, 0.0  ;;  %v500_v5 = vsel %vm274_vm3, %v496_v1, 0.0 }
 0x10b   : > { %v505_v11 = vsel %vm274_vm3, %v499_v6, 0.0 }
 0x10c   : > { %v501_v7 = vsel %vm274_vm3, %v497_v4, 0.0 }
 0x10d   : > { %v502_v8 = vadd.f32 %v501_v7, %v500_v5 }
 0x10f   : > { %v504_v10 = vadd.f32 %v503_v9, %v502_v8 }
 0x111   : > { %v506_v12 = vadd.f32 %v505_v11, %v504_v10 }
 0x113   : > { %v507_v13 = vrot.slane %v506_v12, 4 }
 0x115   : > { %v508_v14 = vadd.f32 %v507_v13, %v506_v12 }
 0x117   : > { %v509_v15 = vrot.slane %v508_v14, 2 }
 0x119   : > { %v510_v16 = vadd.f32 %v509_v15, %v508_v14 }
 0x11b   : > { %v511_v17 = vrot.slane %v510_v16, 1 }
 0x11d   : > { %v512_v18 = vadd.f32 %v511_v17, %v510_v16 }
 0x11f   : > { %v514_v19 = vmul.f32 0.03125, %v512_v18 }
 0x121   : > { %v515_v20 = vsub.f32 %v496_v1, %v514_v19  ;;  %v516_v21 = vsub.f32 %v497_v4, %v514_v19  ;;  %v517_v22 = vsub.f32 %v498_v3, %v514_v19  ;;  %v518_v23 = vsub.f32 %v499_v6, %v514_v19 }
 0x123   : > { %v519_v24 = vmul.f32 %v515_v20, %v515_v20  ;;  %v520_v25 = vmul.f32 %v516_v21, %v516_v21  ;;  %v521_v26 = vmul.f32 %v517_v22, %v517_v22  ;;  %v522_v27 = vmul.f32 %v518_v23, %v518_v23 }
 0x125   : > { %v523_v28 = vsel %vm274_vm3, %v519_v24, 0.0  ;;  %v524_v29 = vsel %vm274_vm3, %v520_v25, 0.0  ;;  %v526_v31 = vsel %vm274_vm3, %v521_v26, 0.0  ;;  %v528_v33 = vsel %vm274_vm3, %v522_v27, 0.0 }
 0x126   : > { %v525_v30 = vadd.f32 %v524_v29, %v523_v28 }
 0x128   : > { %v527_v32 = vadd.f32 %v526_v31, %v525_v30 }
 0x12a   : > { %v529_v34 = vadd.f32 %v528_v33, %v527_v32 }
 0x12c   : > { %v530_v35 = vrot.slane %v529_v34, 4 }
 0x12e   : > { %v531_v36 = vadd.f32 %v530_v35, %v529_v34 }
 0x130   : > { %v532_v37 = vrot.slane %v531_v36, 2 }
 0x132   : > { %v533_v38 = vadd.f32 %v532_v37, %v531_v36 }
 0x134   : > { %v534_v39 = vrot.slane %v533_v38, 1 }
 0x136   : > { %v535_v40 = vadd.f32 %v534_v39, %v533_v38 }
 0x138   : > { %v536_v41 = vmul.f32 0.03125, %v535_v40 }
 0x13a   : > { %v539_v42 = vadd.f32 1e-05, %v536_v41 }
 0x13c   : > { %718 = vrsqrt.f32 %v539_v42 }
 0x146   : > { %v719_v47 = vpop.eup %718 }
 0x147   : > { %v541_v48 = vmul.f32 %v719_v47, %v538_v45 }
 0x149   : > { %v546_v49 = vrot.slane %v541_v48, %v545_v46 }
 0x14a   : > { %572 = sbr.rel (%p661_p5) target bundleno = 341 (0x155), region = 48 }
 0x14b   : > { %v548_v51 = vmul.f32 %v546_v49, %v515_v20  ;;  %v549_v52 = vmul.f32 %v546_v49, %v516_v21  ;;  %v550_v53 = vmul.f32 %v546_v49, %v517_v22  ;;  %v551_v54 = vmul.f32 %v546_v49, %v518_v23 }
 0x14d   : > { %v560_v55 = vadd.f32 %v660_v50, %v548_v51  ;;  %v561_v56 = vadd.f32 %v660_v50, %v549_v52  ;;  %v562_v57 = vadd.f32 %v660_v50, %v550_v53  ;;  %v563_v58 = vadd.f32 %v660_v50, %v551_v54 }
 0x14f   : > { %564 = vst.msk [vmem:[%s774_s25] sm:$0xff] %vm274_vm3, %v560_v55  ;;  %565 = vst.msk [vmem:[%s774_s25 + $0x8] sm:$0xff] %vm274_vm3, %v561_v56 }
 0x150   : > { %566 = vst.msk [vmem:[%s774_s25 + $0x10] sm:$0xff] %vm274_vm3, %v562_v57  ;;  %567 = vst.msk [vmem:[%s774_s25 + $0x18] sm:$0xff] %vm274_vm3, %v563_v58 }
 0x151   : > { %573 = vst.msk [vmem:[#allocation2 + $0x1] sm:$0xff] %vm274_vm3, %v560_v55  ;;  %574 = vst.msk [vmem:[#allocation2 + $0x9] sm:$0xff] %vm274_vm3, %v561_v56 }
 0x152   : > { %575 = vst.msk [vmem:[#allocation2 + $0x19] sm:$0xff] %vm274_vm3, %v562_v57  ;;  %576 = vst.msk [vmem:[#allocation2 + $0x21] sm:$0xff] %vm274_vm3, %v563_v58 }
 0x153   : > { %578 = vst.msk [vmem:[#allocation2 - $0x1] sm:$0x2] %vm577_vm6, %v560_v55  ;;  %579 = vst.msk [vmem:[#allocation2 + $0x17] sm:$0x2] %vm577_vm6, %v562_v57 }
 0x154   : > { %581 = vst.msk [vmem:[#allocation2 + $0xb] sm:$0x40] %vm580_vm7, %v561_v56  ;;  %582 = vst.msk [vmem:[#allocation2 + $0x23] sm:$0x40] %vm580_vm7, %v563_v58 }
 0x155 PF: > { %s15_s18 = sadd.s32 1, %s726_s18  }
 0x156   : > { %p12_p6 = scmp.ge.s32.totalorder %s15_s18, 5  }
 0x158   :  { %14 = sbr.rel (!%p12_p6) target bundleno = 1 (0x1), region = 82 }

</bundles_post_ra>
